<compile_context>
chip_gen: v7x
topology: tpu7x:2x2x1
jax: 0.10.0
libtpu: 0.0.40
codegen_flags: <defaults>
</compile_context>

<pallas_src>
import math

import jax
import jax.numpy as jnp
from jax.experimental import pallas as pl
from jax.experimental.pallas import tpu as pltpu


def _round_up(x, m):
    return (x + m - 1) // m * m


def _cdiv(a, b):
    return (a + b - 1) // b


def _vmem_limit_bytes(default=32 * 1024 * 1024):
    """Scoped-VMEM limit sized per TPU generation (v5e/v6e: 128 MiB phys,
    v7x: 64 MiB phys)."""
    try:
        cap = int(pltpu.get_tpu_info().vmem_capacity_bytes)
    except Exception:
        return default
    return max(default, min((cap * 3) // 4, 96 * 1024 * 1024))


def _rtarget_kernel(x_ref, w_ref, b_ref, o_ref):
    """One (tm, tn) output tile; K is the innermost (reduction) grid axis.

    Accumulates directly into o_ref (f32, VMEM-resident across K); applies
    bias + LeakyReLU(0.25) in place on the last K step.
    """
    k = pl.program_id(2)

    @pl.when(k == 0)
    def _():
        o_ref[...] = jnp.zeros_like(o_ref)

    # x may arrive as f32 (in-kernel cast path) or bf16 (pre-cast path);
    # weights are always bf16; accumulate in f32 on the MXU.
    o_ref[...] += jnp.dot(
        x_ref[...].astype(jnp.bfloat16),
        w_ref[...],
        preferred_element_type=jnp.float32,
    )

    @pl.when(k == pl.num_programs(2) - 1)
    def _():
        y = o_ref[...] + b_ref[...]
        o_ref[...] = jnp.maximum(y, 0.25 * y)  # LeakyReLU(negative_slope=0.25)


def prepare_rtarget_params(w_t, b, *, tn_max=1024, tk_max=512):
    """One-time weight/bias preprocessing (pad + bf16 cast) and N/K tiling.

    w_t: [in_c, out_c] (transpose of PyTorch's [out_c, in_c] weight)
    b:   [out_c]
    """
    in_c, out_c = w_t.shape

    # --- N tiling: lane-dense 128-multiples; keep >= 2 N blocks when possible
    # so the (M, N) parallel axes give both v7x TensorCores work even at B small.
    Np0 = _round_up(out_c, 128)
    n_lane = Np0 // 128
    if n_lane <= 1:
        nblk_n, tn = 1, Np0
    else:
        nblk_n = max(2, _cdiv(Np0, tn_max))
        tn = 128 * _cdiv(n_lane, nblk_n)
    Np = _round_up(Np0, tn)

    # --- K tiling: balanced 128-multiples, capped at tk_max.
    Kp0 = _round_up(in_c, 128)
    nblk_k = max(1, _cdiv(Kp0, tk_max))
    tk = 128 * _cdiv(Kp0 // 128, nblk_k)
    Kp = _round_up(Kp0, tk)

    wp = (
        jnp.zeros((Kp, Np), jnp.bfloat16)
        .at[:in_c, :out_c]
        .set(w_t.astype(jnp.bfloat16))
    )
    bp = jnp.zeros((1, Np), jnp.float32).at[0, :out_c].set(b.astype(jnp.float32))

    return {
        "wp": wp,
        "bp": bp,
        "in_c": in_c,
        "out_c": out_c,
        "tn": tn,
        "tk": tk,
    }


def rtarget_net_apply(params, x, *, tm_max=1024):
    """Linear + LeakyReLU(0.25) forward using prepared (padded bf16) params.

    x: [B, in_c] float.  Returns [B, out_c] float32.
    """
    wp, bp = params["wp"], params["bp"]
    in_c, out_c = params["in_c"], params["out_c"]
    tn, tk = params["tn"], params["tk"]
    Kp, Np = wp.shape
    assert x.shape[1] == in_c

    B = x.shape[0]

    # --- M tiling: balanced 16-multiples (bf16 sublane packing), capped at tm_max.
    Bp0 = _round_up(B, 16)
    nblk_m = max(1, _cdiv(Bp0, tm_max))
    tm = 16 * _cdiv(Bp0 // 16, nblk_m)
    Bp = tm * nblk_m

    n_restream = Np // tn  # how many times x is re-streamed over N blocks
    needs_pad = (Bp != B) or (Kp != in_c)
    if needs_pad:
        # Fuse the bf16 cast into the (single) padding write.
        xp = (
            jnp.zeros((Bp, Kp), jnp.bfloat16)
            .at[:B, :in_c]
            .set(x.astype(jnp.bfloat16))
        )
    elif n_restream > 2:
        # Restreamed many times: pre-cast so the kernel DMAs half the bytes.
        xp = x.astype(jnp.bfloat16)
    else:
        # Aligned + low restream: skip the wrapper pass, cast in-kernel.
        xp = x

    grid = (Bp // tm, Np // tn, Kp // tk)  # M outer, N middle, K (reduction) inner

    flops = 2 * Bp * Kp * Np
    x_bytes = xp.size * xp.dtype.itemsize
    bytes_accessed = (
        x_bytes * grid[1]                      # x re-streamed per N block
        + wp.size * 2 * grid[0]                # w re-streamed per M block
        + bp.size * 4 * grid[0] * grid[1]
        + Bp * Np * 4                          # f32 output writeback
    )

    out_padded = pl.pallas_call(
        _rtarget_kernel,
        out_shape=jax.ShapeDtypeStruct((Bp, Np), jnp.float32),
        grid=grid,
        in_specs=[
            pl.BlockSpec((tm, tk), lambda i, j, k: (i, k)),
            pl.BlockSpec((tk, tn), lambda i, j, k: (k, j)),  # independent of M axis
            pl.BlockSpec((1, tn), lambda i, j, k: (0, j)),
        ],
        out_specs=pl.BlockSpec((tm, tn), lambda i, j, k: (i, j)),
        compiler_params=pltpu.CompilerParams(
            dimension_semantics=("parallel", "parallel", "arbitrary"),
            vmem_limit_bytes=_vmem_limit_bytes(),
        ),
        cost_estimate=pl.CostEstimate(
            flops=flops, transcendentals=0, bytes_accessed=bytes_accessed
        ),
    )(xp, wp, bp)

    if Bp != B or Np != out_c:
        out_padded = out_padded[:B, :out_c]
    return out_padded


def rtarget_net(x, w_t, b, *, tm_max=1024, tn_max=1024, tk_max=512):
    """Convenience one-shot wrapper (prefers prepare_rtarget_params + apply
    when the weights are reused across calls)."""
    params = prepare_rtarget_params(w_t, b, tn_max=tn_max, tk_max=tk_max)
    return rtarget_net_apply(params, x, tm_max=tm_max)


def init_params(key, in_c, out_c):
    # kaiming_normal_ (fan_in, a=0): std = sqrt(2 / in_c). Bias = 0.
    std = math.sqrt(2.0 / in_c)
    w = std * jax.random.normal(key, (out_c, in_c), dtype=jnp.float32)  # PyTorch [out, in]
    b = jnp.zeros((out_c,), dtype=jnp.float32)
    return w, b


def _reference(x, w_t, b):
    # Match the kernel's bf16 operands / f32 accumulation.
    xf = x.astype(jnp.bfloat16).astype(jnp.float32)
    wf = w_t.astype(jnp.bfloat16).astype(jnp.float32)
    y = xf @ wf + b
    return jnp.where(y >= 0, y, 0.25 * y)


# TODO(synk): cos_activation / rn_orthogonal branches of the PyTorch module are
# disabled by its module-level config (cos_activation=False, init='kaiming'),
# so only Linear + LeakyReLU(0.25) is implemented here.

if __name__ == "__main__":
    key = jax.random.PRNGKey(0)
    k_x, k_w, k_x2, k_w2, k_x3, k_w3 = jax.random.split(key, 6)

    # 1) Small shape consistent with the module's forward (feature projection).
    B, in_c, out_c = 8, 32, 32
    x = jax.random.normal(k_x, (B, in_c), dtype=jnp.float32)
    w, b = init_params(k_w, in_c, out_c)
    out = jax.block_until_ready(rtarget_net(x, w.T, b))
    ref = _reference(x, w.T, b)
    assert out.shape == (B, out_c)
    assert jnp.allclose(out, ref, atol=1e-3, rtol=1e-3)

    # 2) Non-multiple shape with small tile caps so the full (M, N, K) grid and
    #    the in-place K accumulation / finalize path are exercised (grid (2,2,3)).
    B2, in_c2, out_c2 = 200, 384, 200
    x2 = jax.random.normal(k_x2, (B2, in_c2), dtype=jnp.float32)
    w2, b2 = init_params(k_w2, in_c2, out_c2)
    params2 = prepare_rtarget_params(w2.T, b2, tn_max=128, tk_max=128)
    out2 = jax.block_until_ready(rtarget_net_apply(params2, x2, tm_max=128))
    ref2 = _reference(x2, w2.T, b2)
    assert out2.shape == (B2, out_c2)
    assert jnp.allclose(out2, ref2, atol=2e-2, rtol=2e-2)

    # 3) Aligned shape: exercises the no-pad fast path (f32 x, in-kernel cast).
    B3, in_c3, out_c3 = 256, 128, 256
    x3 = jax.random.normal(k_x3, (B3, in_c3), dtype=jnp.float32)
    w3, b3 = init_params(k_w3, in_c3, out_c3)
    params3 = prepare_rtarget_params(w3.T, b3)
    out3 = jax.block_until_ready(rtarget_net_apply(params3, x3))
    ref3 = _reference(x3, w3.T, b3)
    assert out3.shape == (B3, out_c3)
    assert jnp.allclose(out3, ref3, atol=1e-2, rtol=1e-2)

    print("KERNEL_OK")
</pallas_src>

<mosaic_0001>
module attributes {stable_mosaic.version = 11 : i64} {
  func.func @_rtarget_kernel(%arg0: i32, %arg1: i32, %arg2: i32, %arg3: memref<16x128xbf16, #tpu.memory_space<vmem>>, %arg4: memref<128x128xbf16, #tpu.memory_space<vmem>>, %arg5: memref<1x128xf32, #tpu.memory_space<vmem>>, %arg6: memref<16x128xf32, #tpu.memory_space<vmem>>) attributes {dimension_semantics = [#tpu.dimension_semantics<parallel>, #tpu.dimension_semantics<parallel>, #tpu.dimension_semantics<arbitrary>], iteration_bounds = array<i64: 1, 1, 1>, scalar_prefetch = 0 : i64, scratch_operands = 0 : i64, tpu.core_type = #tpu.core_type<tc>, window_params = [{transform_indices = @transform_0, window_bounds = array<i64: 16, 128>}, {transform_indices = @transform_1, window_bounds = array<i64: 128, 128>}, {transform_indices = @transform_2, window_bounds = array<i64: 1, 128>}, {transform_indices = @transform_3, window_bounds = array<i64: 16, 128>}]} {
    %c0_i32 = arith.constant 0 : i32
    %0 = arith.cmpi eq, %arg2, %c0_i32 : i32
    %1 = arith.extui %0 : i1 to i32
    %c0_i32_0 = arith.constant 0 : i32
    %2 = arith.cmpi ne, %1, %c0_i32_0 : i32
    scf.if %2 {
      %cst_10 = arith.constant 0.000000e+00 : f32
      %12 = vector.broadcast %cst_10 : f32 to vector<16x128xf32>
      %c0_11 = arith.constant 0 : index
      %c0_12 = arith.constant 0 : index
      %13 = vector.load %arg6[%c0_11, %c0_12] : memref<16x128xf32, #tpu.memory_space<vmem>>, vector<16x128xf32>
      tpu.vector_store %arg6[%c0_11, %c0_12], %12 {strides = array<i32>} : memref<16x128xf32, #tpu.memory_space<vmem>>, vector<16x128xf32>,
    } else {
    }
    %c0 = arith.constant 0 : index
    %c0_1 = arith.constant 0 : index
    %3 = vector.load %arg6[%c0, %c0_1] : memref<16x128xf32, #tpu.memory_space<vmem>>, vector<16x128xf32>
    %c0_2 = arith.constant 0 : index
    %c0_3 = arith.constant 0 : index
    %4 = vector.load %arg3[%c0_2, %c0_3] : memref<16x128xbf16, #tpu.memory_space<vmem>>, vector<16x128xbf16>
    %c0_4 = arith.constant 0 : index
    %c0_5 = arith.constant 0 : index
    %5 = vector.load %arg4[%c0_4, %c0_5] : memref<128x128xbf16, #tpu.memory_space<vmem>>, vector<128x128xbf16>
    %cst = arith.constant dense<0.000000e+00> : vector<16x128xf32>
    %6 = tpu.matmul %4, %5, %cst {dimension_numbers = #tpu.dot_dimension_numbers<[1], [0], [0], [1], [0, 0, 1, 1], [], []>} : vector<16x128xbf16>, vector<128x128xbf16>, vector<16x128xf32> -> vector<16x128xf32>
    %7 = arith.addf %3, %6 : vector<16x128xf32>
    %c0_6 = arith.constant 0 : index
    %c0_7 = arith.constant 0 : index
    %8 = vector.load %arg6[%c0_6, %c0_7] : memref<16x128xf32, #tpu.memory_space<vmem>>, vector<16x128xf32>
    tpu.vector_store %arg6[%c0_6, %c0_7], %7 {strides = array<i32>} : memref<16x128xf32, #tpu.memory_space<vmem>>, vector<16x128xf32>,
    %c0_i32_8 = arith.constant 0 : i32
    %9 = arith.cmpi eq, %arg2, %c0_i32_8 : i32
    %10 = arith.extui %9 : i1 to i32
    %c0_i32_9 = arith.constant 0 : i32
    %11 = arith.cmpi ne, %10, %c0_i32_9 : i32
    scf.if %11 {
      %c0_10 = arith.constant 0 : index
      %c0_11 = arith.constant 0 : index
      %12 = vector.load %arg6[%c0_10, %c0_11] : memref<16x128xf32, #tpu.memory_space<vmem>>, vector<16x128xf32>
      %c0_12 = arith.constant 0 : index
      %c0_13 = arith.constant 0 : index
      %13 = vector.load %arg5[%c0_12, %c0_13] : memref<1x128xf32, #tpu.memory_space<vmem>>, vector<1x128xf32>
      %14 = vector.broadcast %13 : vector<1x128xf32> to vector<16x128xf32>
      %15 = arith.addf %12, %14 : vector<16x128xf32>
      %cst_14 = arith.constant 2.500000e-01 : f32
      %16 = vector.broadcast %cst_14 : f32 to vector<16x128xf32>
      %17 = arith.mulf %16, %15 : vector<16x128xf32>
      %18 = arith.maximumf %15, %17 : vector<16x128xf32>
      %c0_15 = arith.constant 0 : index
      %c0_16 = arith.constant 0 : index
      %19 = vector.load %arg6[%c0_15, %c0_16] : memref<16x128xf32, #tpu.memory_space<vmem>>, vector<16x128xf32>
      tpu.vector_store %arg6[%c0_15, %c0_16], %18 {strides = array<i32>} : memref<16x128xf32, #tpu.memory_space<vmem>>, vector<16x128xf32>,
    } else {
    }
    return
  }
  func.func @transform_0(%arg0: i32, %arg1: i32, %arg2: i32) -> (i32, i32) {
    %c0_i32 = arith.constant 0 : i32
    return %arg0, %arg2 : i32, i32
  }
  func.func @transform_1(%arg0: i32, %arg1: i32, %arg2: i32) -> (i32, i32) {
    %c0_i32 = arith.constant 0 : i32
    return %arg2, %arg1 : i32, i32
  }
  func.func @transform_2(%arg0: i32, %arg1: i32, %arg2: i32) -> (i32, i32) {
    %c0_i32 = arith.constant 0 : i32
    %c0_i32_0 = arith.constant 0 : i32
    return %c0_i32, %arg1 : i32, i32
  }
  func.func @transform_3(%arg0: i32, %arg1: i32, %arg2: i32) -> (i32, i32) {
    %c0_i32 = arith.constant 0 : i32
    return %arg0, %arg1 : i32, i32
  }
}

</mosaic_0001>

<bundles_post_ra>
// kernel: tpu_custom_call.1
= control target key start
LH: loop header
LB: loop body
LE: loop exit
PB: predicated region body
PF: predicated region fallthrough
CT: control target
= control target key end

     0   :  { %8 = vsyncpa [#allocation3], 0  ;;  %s404_s0 = inlined_call_operand.hbm [shape: bf16[16,128], index: 0, kind: input, shape index: {}]   ;;  %s405_s1 = inlined_call_operand.hbm [shape: bf16[128,128], index: 1, kind: input, shape index: {}]   ;;  %s406_s2 = inlined_call_operand.vmem [shape: f32[1,128], index: 2, kind: input, shape index: {}]   ;;  %s407_s3 = inlined_call_operand.hbm [shape: f32[16,128], index: 3, kind: output, shape index: {}]  }
   0x1   :  { %9 = vsyncpa [#allocation6], 0 }
   0x2   :  { %10 = vsyncpa [#allocation4], 0  ;;  %s336_s12 = smov [#allocation2]   ;;  %s264_s16 = scalar_lea.hbm %s404_s0, 128 }
   0x3   :  { %s16_s13 = sshll.u32 %s336_s12, 4  ;;  %p265_p0 = scmp.ne.s32.totalorder %s404_s0, %s264_s16  ;;  %s17_s13 = int_to_ptr.vmem [resolvable:$true] %s16_s13 }
   0x4   :  { %p268_p1 = scmp.lt.u32.totalorder %s264_s16, %s404_s0 }
   0x6   :  { %p270_p2 = pnand %p268_p1, %p265_p0 }
   0x8   :  { %273 = shalt.err (!%p270_p2)
}
   0x9   :  { %s274_s21 = scalar_lea.vmem %s17_s13, 128  ;;  %p279_p4 = scmp.lt.s32.totalorder %s17_s13, %s17_s13 }
   0xa   :  { %p275_p3 = scmp.ne.s32.totalorder %s17_s13, %s274_s21  ;;  %p280_p5 = scmp.lt.s32.totalorder %s274_s21, %s274_s21 }
   0xc   :  { %p281_p6 = por %p280_p5, %p279_p4 }
   0xe   :  { %p282_p7 = pnand %p281_p6, %p275_p3 }
  0x10   :  { %285 = shalt.err (!%p282_p7)
}
  0x11   :  { %s337_s22 = smov 64   ;;  %s338_s23 = smov 4  }
  0x12   :  { %22 = dma.hbm_to_vmem [thread:$0]  %s404_s0, 128, %s17_s13, [#allocation3], %s337_s22, %s337_s22, %s338_s23  }
  0x13   :  { %s339_s26 = smov [#allocation5]   ;;  %s286_s30 = scalar_lea.hbm %s405_s1, 1024 }
  0x14   :  { %s28_s27 = sshll.u32 %s339_s26, 4  ;;  %p287_p8 = scmp.ne.s32.totalorder %s405_s1, %s286_s30  ;;  %s29_s27 = int_to_ptr.vmem [resolvable:$true] %s28_s27 }
  0x15   :  { %p290_p9 = scmp.lt.u32.totalorder %s286_s30, %s405_s1 }
  0x17   :  { %p292_p10 = pnand %p290_p9, %p287_p8 }
  0x19   :  { %295 = shalt.err (!%p292_p10)
}
  0x1a   :  { %s296_s8 = scalar_lea.vmem %s29_s27, 1024  ;;  %p301_p12 = scmp.lt.s32.totalorder %s29_s27, %s29_s27 }
  0x1b   :  { %p297_p11 = scmp.ne.s32.totalorder %s29_s27, %s296_s8  ;;  %p302_p13 = scmp.lt.s32.totalorder %s296_s8, %s296_s8 }
  0x1d   :  { %p303_p0 = por %p302_p13, %p301_p12 }
  0x1f   :  { %p304_p1 = pnand %p303_p0, %p297_p11 }
  0x21   :  { %307 = shalt.err (!%p304_p1)
}
  0x22   :  { %34 = dma.hbm_to_vmem [thread:$0]  %s405_s1, 1024, %s29_s27, [#allocation6], %s337_s22, %s337_s22, %s338_s23  }
  0x23   :  { %330 = dma.done.wait [#allocation3], 128  }
  0x24   :  { %331 = vsyncadd [#allocation3], 4294967168 }
  0x25   :  { %332 = dma.done.wait [#allocation6], 1024  }
  0x26   :  { %333 = vsyncadd [#allocation6], 4294966272  ;;  %v340_v0 = vmov 0.0   ;;  %vm341_vm0 = vmmov 0   ;;  %v255_v1 = vld [vmem:[#allocation5] sm:$0xff]   ;;  %v256_v2 = vld [vmem:[#allocation5 + $0x8] sm:$0xff]  }
  0x27   :  { %226 = vmatprep.subr.bf16.mxu0 %v340_v0  ;;  %242 = vmatprep.mubr.msk.bf16.mxu0 %vm341_vm0, %v340_v0  ;;  %v257_v3 = vld [vmem:[#allocation5 + $0x10] sm:$0xff]   ;;  %v258_v4 = vld [vmem:[#allocation5 + $0x18] sm:$0xff]   ;;  %v259_v5 = vld [vmem:[#allocation5 + $0x20] sm:$0xff]   ;;  %s342_s11 = smov [#allocation7]  }
  0x28   :  { %227 = vmatpush3.bf16.msra.mxu0 %v255_v1  ;;  %v260_v6 = vld [vmem:[#allocation5 + $0x28] sm:$0xff]   ;;  %v261_v7 = vld [vmem:[#allocation5 + $0x30] sm:$0xff]   ;;  %v262_v8 = vld [vmem:[#allocation5 + $0x38] sm:$0xff]   ;;  %s194_s12 = sshll.u32 %s342_s11, 4  ;;  %s195_s12 = int_to_ptr.vmem [resolvable:$true] %s194_s12 }
  0x29   :  { %228 = vmatprep.subr.bf16.mxu0 %v340_v0  ;;  %v263_v9 = vld [vmem:[#allocation2] sm:$0xff]   ;;  %s308_s13 = scalar_lea.vmem %s195_s12, 256  ;;  %p313_p3 = scmp.lt.s32.totalorder %s195_s12, %s195_s12 }
  0x2a   :  { %v216_v11 = vld [vmem:[%s406_s2] ss:$0 sm:$0xff]  ;;  %p309_p2 = scmp.ne.s32.totalorder %s195_s12, %s308_s13  ;;  %p314_p4 = scmp.lt.s32.totalorder %s308_s13, %s308_s13 }
  0x2c   :  { %229 = vmatpush3.bf16.msra.mxu0 %v256_v2  ;;  %p315_p5 = por %p314_p4, %p313_p3 }
  0x2d   :  { %230 = vmatprep.subr.bf16.mxu0 %v340_v0 }
  0x2e   :  { %p316_p6 = pnand %p315_p5, %p309_p2 }
  0x30   :  { %231 = vmatpush3.bf16.msra.mxu0 %v257_v3 }
  0x31   :  { %232 = vmatprep.subr.bf16.mxu0 %v340_v0 }
  0x34   :  { %233 = vmatpush3.bf16.msra.mxu0 %v258_v4 }
  0x35   :  { %234 = vmatprep.subr.bf16.mxu0 %v340_v0 }
  0x38   :  { %235 = vmatpush3.bf16.msra.mxu0 %v259_v5 }
  0x39   :  { %236 = vmatprep.subr.bf16.mxu0 %v340_v0 }
  0x3c   :  { %237 = vmatpush3.bf16.msra.mxu0 %v260_v6 }
  0x3d   :  { %238 = vmatprep.subr.bf16.mxu0 %v340_v0 }
  0x40   :  { %239 = vmatpush3.bf16.msra.mxu0 %v261_v7 }
  0x41   :  { %240 = vmatprep.subr.bf16.mxu0 %v340_v0 }
  0x44   :  { %241 = vmatpush3.bf16.msra.mxu0 %v262_v8 }
  0x47   :  { %243 = vmatmul.mubr.bf16.vlgmr.msra.gmra.mrb[0].mxu0 %v263_v9 }
 0x11a   :  { %v158_v10 = vpop.f32.mrb[0].mxu0 }
 0x11b   :  { %v244_v12 = vpop.f32.mrb[1].mxu0  ;;  %v181_v15 = vadd.f32 %v216_v11, %v158_v10 }
 0x11c   :  { %v161_v13 = vpop.f32.mrb[2].mxu0 }
 0x11d   :  { %v245_v14 = vpop.f32.mrb[3].mxu0  ;;  %v182_v16 = vadd.f32 %v216_v11, %v161_v13  ;;  %v183_v17 = vmul.f32 0.25, %v181_v15 }
 0x11f   :  { %v184_v18 = vmul.f32 0.25, %v182_v16  ;;  %v185_v19 = vmax.f32 %v181_v15, %v183_v17 }
 0x121   :  { %v186_v20 = vmax.f32 %v182_v16, %v184_v18  ;;  %187 = vst [vmem:[#allocation7] sm:$0xff] %v185_v19 }
 0x123   :  { %188 = vst [vmem:[#allocation7 + $0x8] sm:$0xff] %v186_v20 }
 0x124   :  { %319 = shalt.err (!%p316_p6)
}
 0x125   :  { %s320_s15 = scalar_lea.hbm %s407_s3, 256 }
 0x126   :  { %p321_p7 = scmp.ne.s32.totalorder %s407_s3, %s320_s15  ;;  %p324_p8 = scmp.lt.u32.totalorder %s320_s15, %s407_s3 }
 0x128   :  { %p326_p9 = pnand %p324_p8, %p321_p7 }
 0x12a   :  { %329 = shalt.err (!%p326_p9)
}
 0x12b   :  { %s343_s20 = smov 128   ;;  %s344_s21 = smov 8  }
 0x12c   :  { %200 = dma.vmem_to_hbm [thread:$0]  %s195_s12, 256, %s407_s3, [#allocation4], %s343_s20, %s343_s20, %s344_s21  }
 0x12d   :  { %334 = dma.done.wait [#allocation4], 256  }
 0x12e   :  { %335 = vsyncadd [#allocation4], 4294967040 }
 0x12f   :  { %204 = vsyncpa [#allocation3], 1 }
 0x130   :  { %205 = vsyncpa [#allocation6], 1 }
 0x131   :  { %206 = vsyncpa [#allocation4], 1 }

</bundles_post_ra>
